<compile_context>
chip_gen: v6e
topology: v6e:2x2x1
jax: 0.10.0
libtpu: 0.0.40
codegen_flags: <defaults>
</compile_context>

<pallas_src>
import jax
import jax.numpy as jnp
from jax.experimental import pallas as pl
from jax.experimental.pallas import tpu as pltpu

NEG_SLOPE = 0.01      # PyTorch LeakyReLU default negative_slope
COS_EPS = 1e-8        # torch.cosine_similarity default eps


def _leaky_relu(x):
    return jnp.where(x > 0, x, NEG_SLOPE * x)


def _round_up(n, m):
    return ((n + m - 1) // m) * m


def author_accum_pop_kernel(
    x_ref,        # [TN, H]     snapshot readouts tile (f32)
    ah_ref,       # [TN, A, E]  padded per-paper author features 'h' (f32)
    ac_ref,       # [TN, A]     per-author accum_citations (f32)
    am_ref,       # [TN, A]     author validity mask 1/0 (f32)
    oh_ref,       # [TN, B+1]   one-hot(final_boxes) (f32)
    rv_ref,       # [TN, 1]     row validity 1/0 (f32, 0 on pad rows)
    w_pe_ref,     # [H, H]      pop_encoder weight (bf16)
    b_pe_ref,     # [1, H]      pop_encoder bias   (f32)
    tbl_ref,      # [B+1, E]    accum_emb table    (f32, padding row zero)
    w_mix_ref,    # [2E, H]     pop_mix weight     (bf16)
    b_mix_ref,    # [1, H]      pop_mix bias       (f32)
    w_out_ref,    # [1, H]      fc_out weight, row layout (f32)
    b_out_ref,    # [1, 1]      fc_out bias        (f32)
    out_ref,      # [TN, 1]     out
    emb_ref,      # [TN, H]     pop_embs
    loss_ref,     # [TN, 1]     masked per-row (1 - cos) terms
):
    e = ah_ref.shape[2]

    # ---- pop_encoder: LeakyReLU(x @ W_pe + b_pe); bf16 into the MXU, f32 accumulate.
    x = x_ref[...].astype(jnp.bfloat16)
    pop = _leaky_relu(
        jnp.dot(x, w_pe_ref[...], preferred_element_type=jnp.float32) + b_pe_ref[...]
    )                                                            # [TN, H] f32
    emb_ref[...] = pop.astype(emb_ref.dtype)

    # ---- author aggregation: masked edge-softmax over author slots, weighted sum.
    c = ac_ref[...].astype(jnp.float32)                          # [TN, A]
    amask = am_ref[...].astype(jnp.float32)                      # [TN, A]
    c = jnp.where(amask > 0.0, c, jnp.float32(-1e30))
    c = c - jnp.max(c, axis=-1, keepdims=True)                   # numerically stable
    w = jnp.exp(c) * amask
    inv_den = pl.reciprocal(
        jnp.maximum(jnp.sum(w, axis=-1, keepdims=True), jnp.float32(1e-30)),
        approx=True,
    )
    p = w * inv_den                                              # [TN, A] rows sum to 1 (or 0)
    ah = ah_ref[...].astype(jnp.float32)                         # [TN, A, E]
    author_embs = jnp.sum(p[:, :, None] * ah, axis=1)            # [TN, E]

    # ---- accum_emb lookup as one-hot @ table (padding_idx row of the table is zero).
    paper_embs = jnp.dot(oh_ref[...], tbl_ref[...],
                         preferred_element_type=jnp.float32)     # [TN, E]

    # ---- pop_mix on concat(author, paper): split W_mix instead of concatenating lanes.
    wa = w_mix_ref[0:e, :]                                       # [E, H] bf16 (static slice)
    wb = w_mix_ref[e:2 * e, :]                                   # [E, H] bf16
    mix_pre = (
        jnp.dot(author_embs.astype(jnp.bfloat16), wa, preferred_element_type=jnp.float32)
        + jnp.dot(paper_embs.astype(jnp.bfloat16), wb, preferred_element_type=jnp.float32)
        + b_mix_ref[...]
    )
    pop_mix = _leaky_relu(mix_pre)                               # [TN, H] f32

    # ---- pop_loss rows: 1 - cosine_similarity(pop, pop_mix); rsqrt on the EUP,
    #      no sqrt/divide. Pad rows masked to exactly 0.
    dot = jnp.sum(pop * pop_mix, axis=-1, keepdims=True)
    sa = jnp.sum(pop * pop, axis=-1, keepdims=True)
    sb = jnp.sum(pop_mix * pop_mix, axis=-1, keepdims=True)
    inv_nrm = jax.lax.rsqrt(jnp.maximum(sa * sb, jnp.float32(COS_EPS * COS_EPS)))
    cos = dot * inv_nrm
    rmask = rv_ref[...]
    loss_ref[...] = ((1.0 - cos) * rmask).astype(loss_ref.dtype)

    # ---- fc_out as a lane reduction (avoids a 1-column MXU matmul).
    o = jnp.sum(pop * w_out_ref[...], axis=-1, keepdims=True) + b_out_ref[...]
    out_ref[...] = _leaky_relu(o).astype(out_ref.dtype)


def author_accum_pop_forward(snapshot_readouts, author_h, accum_citations,
                             author_mask, final_boxes, params,
                             *, box_count=5, block_rows=256):
    """Runs AuthorAccumCitationPopModule.forward. Returns (out, pop_embs, pop_loss)."""
    n, h = snapshot_readouts.shape
    _, a, e = author_h.shape
    b1 = box_count + 1
    w_pe, b_pe, emb_tbl, w_mix, b_mix, w_out, b_out = params

    # Weight prep (once, outside the kernel): bf16 for MXU operands, fc_out weight as a row.
    w_pe_bf = w_pe.astype(jnp.bfloat16)                              # [H, H]
    w_mix_bf = w_mix.astype(jnp.bfloat16)                            # [2E, H]
    w_out_row = w_out.reshape(1, h).astype(jnp.float32)              # [1, H]
    b_pe = b_pe.reshape(1, h).astype(jnp.float32)
    b_mix = b_mix.reshape(1, h).astype(jnp.float32)
    b_out = b_out.reshape(1, 1).astype(jnp.float32)
    tbl = emb_tbl.astype(jnp.float32)                                # [B+1, E]

    # Row tiling: pad N up to a multiple of the row tile (tile multiple of 8 sublanes).
    tn = min(block_rows, _round_up(n, 8))
    n_pad = _round_up(n, tn)
    grid = (n_pad // tn,)

    def pad_rows(arr):
        return jnp.pad(arr, ((0, n_pad - n),) + ((0, 0),) * (arr.ndim - 1))

    x_p = pad_rows(snapshot_readouts.astype(jnp.float32))
    ah_p = pad_rows(author_h.astype(jnp.float32))
    ac_p = pad_rows(accum_citations.astype(jnp.float32))
    am_p = pad_rows(author_mask.astype(jnp.float32))
    oh_p = pad_rows(jax.nn.one_hot(final_boxes, b1, dtype=jnp.float32))
    rv_p = (jnp.arange(n_pad) < n).astype(jnp.float32).reshape(n_pad, 1)

    row2 = lambda shp: pl.BlockSpec(shp, lambda i: (i, 0))
    row3 = lambda shp: pl.BlockSpec(shp, lambda i: (i, 0, 0))
    full2 = lambda shp: pl.BlockSpec(shp, lambda i: (0, 0))   # VMEM-resident weight

    out_p, emb_p, loss_rows = pl.pallas_call(
        author_accum_pop_kernel,
        grid_spec=pltpu.PrefetchScalarGridSpec(
            num_scalar_prefetch=0,
            grid=grid,
            in_specs=[
                row2((tn, h)),        # snapshot readouts
                row3((tn, a, e)),     # author features
                row2((tn, a)),        # accum citations
                row2((tn, a)),        # author mask
                row2((tn, b1)),       # one-hot final_boxes
                row2((tn, 1)),        # row validity
                full2((h, h)),        # w_pe (bf16)
                full2((1, h)),        # b_pe
                full2((b1, e)),       # accum_emb table
                full2((2 * e, h)),    # w_mix (bf16)
                full2((1, h)),        # b_mix
                full2((1, h)),        # w_out row
                full2((1, 1)),        # b_out
            ],
            out_specs=(
                row2((tn, 1)),        # out
                row2((tn, h)),        # pop_embs
                row2((tn, 1)),        # per-row loss terms
            ),
        ),
        out_shape=(
            jax.ShapeDtypeStruct((n_pad, 1), jnp.float32),
            jax.ShapeDtypeStruct((n_pad, h), jnp.float32),
            jax.ShapeDtypeStruct((n_pad, 1), jnp.float32),
        ),
        compiler_params=pltpu.CompilerParams(
            dimension_semantics=("parallel",),
        ),
    )(x_p, ah_p, ac_p, am_p, oh_p, rv_p,
      w_pe_bf, b_pe, tbl, w_mix_bf, b_mix, w_out_row, b_out)

    out = out_p[:n]
    pop_embs = emb_p[:n]
    pop_loss = jnp.sum(loss_rows) / n     # pad rows contribute exactly 0
    return out, pop_embs, pop_loss


def init_params(key, *, embed_dim, hidden_dim, box_count):
    """PyTorch-Linear-style init (uniform +/- 1/sqrt(fan_in)); Embedding ~ N(0,1)."""
    ks = jax.random.split(key, 7)

    def linear(kw, kb, fan_in, fan_out):
        bound = 1.0 / jnp.sqrt(jnp.float32(fan_in))
        w = jax.random.uniform(kw, (fan_in, fan_out), jnp.float32, -bound, bound)
        b = jax.random.uniform(kb, (1, fan_out), jnp.float32, -bound, bound)
        return w, b

    w_pe, b_pe = linear(ks[0], ks[1], hidden_dim, hidden_dim)        # pop_encoder
    w_mix, b_mix = linear(ks[2], ks[3], 2 * embed_dim, hidden_dim)   # pop_mix
    w_out, b_out = linear(ks[4], ks[5], hidden_dim, 1)               # fc_out
    emb_tbl = jax.random.normal(ks[6], (box_count + 1, embed_dim), jnp.float32)
    emb_tbl = emb_tbl.at[box_count].set(0.0)   # padding_idx=-1 -> last row zeroed
    return (w_pe, b_pe, emb_tbl, w_mix, b_mix, w_out, b_out)


if __name__ == "__main__":
    N, H, E, A, BOX = 8, 32, 32, 4, 5   # snapshots, hidden_dim, embed_dim, max authors, box_count
    key = jax.random.PRNGKey(0)
    ks = jax.random.split(key, 6)

    snapshot_readouts = jax.random.normal(ks[0], (N, H), jnp.float32)
    author_h = jax.random.normal(ks[1], (N, A, E), jnp.float32)
    accum_citations = jax.random.uniform(ks[2], (N, A), jnp.float32, 0.0, 10.0)
    n_auth = jax.random.randint(ks[3], (N,), 1, A + 1)
    author_mask = (jnp.arange(A)[None, :] < n_auth[:, None]).astype(jnp.float32)
    final_boxes = jax.random.randint(ks[4], (N,), 0, BOX + 1)

    params = init_params(ks[5], embed_dim=E, hidden_dim=H, box_count=BOX)

    out, pop_embs, pop_loss = author_accum_pop_forward(
        snapshot_readouts, author_h, accum_citations, author_mask, final_boxes,
        params, box_count=BOX)
    jax.block_until_ready((out, pop_embs, pop_loss))

    assert out.shape == (N, 1)
    assert pop_embs.shape == (N, H)
    assert pop_loss.shape == ()
    assert bool(jnp.all(jnp.isfinite(out)))
    assert bool(jnp.all(jnp.isfinite(pop_embs)))
    assert bool(jnp.isfinite(pop_loss))
    print("KERNEL_OK")
</pallas_src>

<mosaic_0001>
module attributes {stable_mosaic.version = 11 : i64} {
  func.func @author_accum_pop_kernel(%arg0: i32, %arg1: memref<8x32xf32, #tpu.memory_space<vmem>>, %arg2: memref<8x4x32xf32, #tpu.memory_space<vmem>>, %arg3: memref<8x4xf32, #tpu.memory_space<vmem>>, %arg4: memref<8x4xf32, #tpu.memory_space<vmem>>, %arg5: memref<8x6xf32, #tpu.memory_space<vmem>>, %arg6: memref<8x1xf32, #tpu.memory_space<vmem>>, %arg7: memref<32x32xbf16, #tpu.memory_space<vmem>>, %arg8: memref<1x32xf32, #tpu.memory_space<vmem>>, %arg9: memref<6x32xf32, #tpu.memory_space<vmem>>, %arg10: memref<64x32xbf16, #tpu.memory_space<vmem>>, %arg11: memref<1x32xf32, #tpu.memory_space<vmem>>, %arg12: memref<1x32xf32, #tpu.memory_space<vmem>>, %arg13: memref<1x1xf32, #tpu.memory_space<vmem>>, %arg14: memref<8x1xf32, #tpu.memory_space<vmem>>, %arg15: memref<8x32xf32, #tpu.memory_space<vmem>>, %arg16: memref<8x1xf32, #tpu.memory_space<vmem>>) attributes {dimension_semantics = [#tpu.dimension_semantics<parallel>], iteration_bounds = array<i64: 1>, scalar_prefetch = 0 : i64, scratch_operands = 0 : i64, tpu.core_type = #tpu.core_type<tc>, window_params = [{transform_indices = @transform_0, window_bounds = array<i64: 8, 32>}, {transform_indices = @transform_1, window_bounds = array<i64: 8, 4, 32>}, {transform_indices = @transform_2, window_bounds = array<i64: 8, 4>}, {transform_indices = @transform_3, window_bounds = array<i64: 8, 4>}, {transform_indices = @transform_4, window_bounds = array<i64: 8, 6>}, {transform_indices = @transform_5, window_bounds = array<i64: 8, 1>}, {pipeline_mode = #tpu.pipeline_mode<synchronous>, transform_indices = @transform_6, window_bounds = array<i64: 32, 32>}, {pipeline_mode = #tpu.pipeline_mode<synchronous>, transform_indices = @transform_7, window_bounds = array<i64: 1, 32>}, {pipeline_mode = #tpu.pipeline_mode<synchronous>, transform_indices = @transform_8, window_bounds = array<i64: 6, 32>}, {pipeline_mode = #tpu.pipeline_mode<synchronous>, transform_indices = @transform_9, window_bounds = array<i64: 64, 32>}, {pipeline_mode = #tpu.pipeline_mode<synchronous>, transform_indices = @transform_10, window_bounds = array<i64: 1, 32>}, {pipeline_mode = #tpu.pipeline_mode<synchronous>, transform_indices = @transform_11, window_bounds = array<i64: 1, 32>}, {pipeline_mode = #tpu.pipeline_mode<synchronous>, transform_indices = @transform_12, window_bounds = array<i64: 1, 1>}, {transform_indices = @transform_13, window_bounds = array<i64: 8, 1>}, {transform_indices = @transform_14, window_bounds = array<i64: 8, 32>}, {transform_indices = @transform_15, window_bounds = array<i64: 8, 1>}]} {
    %c0 = arith.constant 0 : index
    %c0_0 = arith.constant 0 : index
    %0 = vector.load %arg1[%c0, %c0_0] : memref<8x32xf32, #tpu.memory_space<vmem>>, vector<8x32xf32>
    %1 = arith.truncf %0 : vector<8x32xf32> to vector<8x32xbf16>
    %c0_1 = arith.constant 0 : index
    %c0_2 = arith.constant 0 : index
    %2 = vector.load %arg7[%c0_1, %c0_2] : memref<32x32xbf16, #tpu.memory_space<vmem>>, vector<32x32xbf16>
    %cst = arith.constant dense<0.000000e+00> : vector<8x32xf32>
    %3 = tpu.matmul %1, %2, %cst {dimension_numbers = #tpu.dot_dimension_numbers<[1], [0], [0], [1], [0, 0, 1, 1], [], []>} : vector<8x32xbf16>, vector<32x32xbf16>, vector<8x32xf32> -> vector<8x32xf32>
    %c0_3 = arith.constant 0 : index
    %c0_4 = arith.constant 0 : index
    %4 = vector.load %arg8[%c0_3, %c0_4] : memref<1x32xf32, #tpu.memory_space<vmem>>, vector<1x32xf32>
    %5 = vector.broadcast %4 : vector<1x32xf32> to vector<8x32xf32>
    %6 = arith.addf %3, %5 : vector<8x32xf32>
    %cst_5 = arith.constant 0.000000e+00 : f32
    %7 = vector.broadcast %cst_5 : f32 to vector<8x32xf32>
    %8 = arith.cmpf ogt, %6, %7 : vector<8x32xf32>
    %cst_6 = arith.constant 0.00999999977 : f32
    %9 = vector.broadcast %cst_6 : f32 to vector<8x32xf32>
    %10 = arith.mulf %9, %6 : vector<8x32xf32>
    %11 = arith.select %8, %6, %10 : vector<8x32xi1>, vector<8x32xf32>
    %c0_7 = arith.constant 0 : index
    %c0_8 = arith.constant 0 : index
    %12 = vector.load %arg15[%c0_7, %c0_8] : memref<8x32xf32, #tpu.memory_space<vmem>>, vector<8x32xf32>
    tpu.vector_store %arg15[%c0_7, %c0_8], %11 {strides = array<i32>} : memref<8x32xf32, #tpu.memory_space<vmem>>, vector<8x32xf32>,
    %c0_9 = arith.constant 0 : index
    %c0_10 = arith.constant 0 : index
    %13 = vector.load %arg3[%c0_9, %c0_10] : memref<8x4xf32, #tpu.memory_space<vmem>>, vector<8x4xf32>
    %c0_11 = arith.constant 0 : index
    %c0_12 = arith.constant 0 : index
    %14 = vector.load %arg4[%c0_11, %c0_12] : memref<8x4xf32, #tpu.memory_space<vmem>>, vector<8x4xf32>
    %cst_13 = arith.constant 0.000000e+00 : f32
    %15 = vector.broadcast %cst_13 : f32 to vector<8x4xf32>
    %16 = arith.cmpf ogt, %14, %15 : vector<8x4xf32>
    %cst_14 = arith.constant -1.000000e+30 : f32
    %17 = vector.broadcast %cst_14 : f32 to vector<8x4xf32>
    %18 = arith.select %16, %13, %17 : vector<8x4xi1>, vector<8x4xf32>
    %cst_15 = arith.constant dense<0xFF800000> : vector<8xf32>
    %19 = vector.multi_reduction <maximumf>, %18, %cst_15 [1] : vector<8x4xf32> to vector<8xf32>
    %20 = vector.shape_cast %19 : vector<8xf32> to vector<8x1xf32>
    %21 = vector.broadcast %20 : vector<8x1xf32> to vector<8x4xf32>
    %22 = arith.subf %18, %21 : vector<8x4xf32>
    %23 = math.exp %22 : vector<8x4xf32>
    %24 = arith.mulf %23, %14 : vector<8x4xf32>
    %cst_16 = arith.constant dense<0.000000e+00> : vector<8xf32>
    %25 = vector.multi_reduction <add>, %24, %cst_16 [1] : vector<8x4xf32> to vector<8xf32>
    %26 = vector.shape_cast %25 : vector<8xf32> to vector<8x1xf32>
    %cst_17 = arith.constant 1.000000e-30 : f32
    %27 = vector.broadcast %cst_17 : f32 to vector<8x1xf32>
    %28 = arith.maximumf %26, %27 : vector<8x1xf32>
    %29 = tpu.reciprocal %28 {approx = true} : vector<8x1xf32> -> vector<8x1xf32>
    %30 = vector.broadcast %29 : vector<8x1xf32> to vector<8x4xf32>
    %31 = arith.mulf %24, %30 : vector<8x4xf32>
    %c0_18 = arith.constant 0 : index
    %c0_19 = arith.constant 0 : index
    %c0_20 = arith.constant 0 : index
    %32 = vector.load %arg2[%c0_18, %c0_19, %c0_20] : memref<8x4x32xf32, #tpu.memory_space<vmem>>, vector<8x4x32xf32>
    %33 = vector.shape_cast %31 : vector<8x4xf32> to vector<8x4x1xf32>
    %34 = vector.broadcast %33 : vector<8x4x1xf32> to vector<8x4x32xf32>
    %35 = arith.mulf %34, %32 : vector<8x4x32xf32>
    %cst_21 = arith.constant dense<0.000000e+00> : vector<8x32xf32>
    %36 = vector.multi_reduction <add>, %35, %cst_21 [1] : vector<8x4x32xf32> to vector<8x32xf32>
    %c0_22 = arith.constant 0 : index
    %c0_23 = arith.constant 0 : index
    %37 = vector.load %arg5[%c0_22, %c0_23] : memref<8x6xf32, #tpu.memory_space<vmem>>, vector<8x6xf32>
    %c0_24 = arith.constant 0 : index
    %c0_25 = arith.constant 0 : index
    %38 = vector.load %arg9[%c0_24, %c0_25] : memref<6x32xf32, #tpu.memory_space<vmem>>, vector<6x32xf32>
    %cst_26 = arith.constant dense<0.000000e+00> : vector<8x32xf32>
    %39 = tpu.matmul %37, %38, %cst_26 {dimension_numbers = #tpu.dot_dimension_numbers<[1], [0], [0], [1], [0, 0, 1, 1], [], []>} : vector<8x6xf32>, vector<6x32xf32>, vector<8x32xf32> -> vector<8x32xf32>
    %c0_27 = arith.constant 0 : index
    %c0_28 = arith.constant 0 : index
    %40 = vector.load %arg10[%c0_27, %c0_28] : memref<64x32xbf16, #tpu.memory_space<vmem>>, vector<32x32xbf16>
    %c32 = arith.constant 32 : index
    %c0_29 = arith.constant 0 : index
    %41 = vector.load %arg10[%c32, %c0_29] : memref<64x32xbf16, #tpu.memory_space<vmem>>, vector<32x32xbf16>
    %42 = arith.truncf %36 : vector<8x32xf32> to vector<8x32xbf16>
    %cst_30 = arith.constant dense<0.000000e+00> : vector<8x32xf32>
    %43 = tpu.matmul %42, %40, %cst_30 {dimension_numbers = #tpu.dot_dimension_numbers<[1], [0], [0], [1], [0, 0, 1, 1], [], []>} : vector<8x32xbf16>, vector<32x32xbf16>, vector<8x32xf32> -> vector<8x32xf32>
    %44 = arith.truncf %39 : vector<8x32xf32> to vector<8x32xbf16>
    %cst_31 = arith.constant dense<0.000000e+00> : vector<8x32xf32>
    %45 = tpu.matmul %44, %41, %cst_31 {dimension_numbers = #tpu.dot_dimension_numbers<[1], [0], [0], [1], [0, 0, 1, 1], [], []>} : vector<8x32xbf16>, vector<32x32xbf16>, vector<8x32xf32> -> vector<8x32xf32>
    %46 = arith.addf %43, %45 : vector<8x32xf32>
    %c0_32 = arith.constant 0 : index
    %c0_33 = arith.constant 0 : index
    %47 = vector.load %arg11[%c0_32, %c0_33] : memref<1x32xf32, #tpu.memory_space<vmem>>, vector<1x32xf32>
    %48 = vector.broadcast %47 : vector<1x32xf32> to vector<8x32xf32>
    %49 = arith.addf %46, %48 : vector<8x32xf32>
    %cst_34 = arith.constant 0.000000e+00 : f32
    %50 = vector.broadcast %cst_34 : f32 to vector<8x32xf32>
    %51 = arith.cmpf ogt, %49, %50 : vector<8x32xf32>
    %cst_35 = arith.constant 0.00999999977 : f32
    %52 = vector.broadcast %cst_35 : f32 to vector<8x32xf32>
    %53 = arith.mulf %52, %49 : vector<8x32xf32>
    %54 = arith.select %51, %49, %53 : vector<8x32xi1>, vector<8x32xf32>
    %55 = arith.mulf %11, %54 : vector<8x32xf32>
    %cst_36 = arith.constant dense<0.000000e+00> : vector<8xf32>
    %56 = vector.multi_reduction <add>, %55, %cst_36 [1] : vector<8x32xf32> to vector<8xf32>
    %57 = vector.shape_cast %56 : vector<8xf32> to vector<8x1xf32>
    %58 = arith.mulf %11, %11 : vector<8x32xf32>
    %cst_37 = arith.constant dense<0.000000e+00> : vector<8xf32>
    %59 = vector.multi_reduction <add>, %58, %cst_37 [1] : vector<8x32xf32> to vector<8xf32>
    %60 = vector.shape_cast %59 : vector<8xf32> to vector<8x1xf32>
    %61 = arith.mulf %54, %54 : vector<8x32xf32>
    %cst_38 = arith.constant dense<0.000000e+00> : vector<8xf32>
    %62 = vector.multi_reduction <add>, %61, %cst_38 [1] : vector<8x32xf32> to vector<8xf32>
    %63 = vector.shape_cast %62 : vector<8xf32> to vector<8x1xf32>
    %64 = arith.mulf %60, %63 : vector<8x1xf32>
    %cst_39 = arith.constant 1.000000e-16 : f32
    %65 = vector.broadcast %cst_39 : f32 to vector<8x1xf32>
    %66 = arith.maximumf %64, %65 : vector<8x1xf32>
    %67 = math.rsqrt %66 : vector<8x1xf32>
    %68 = arith.mulf %57, %67 : vector<8x1xf32>
    %c0_40 = arith.constant 0 : index
    %c0_41 = arith.constant 0 : index
    %69 = vector.load %arg6[%c0_40, %c0_41] : memref<8x1xf32, #tpu.memory_space<vmem>>, vector<8x1xf32>
    %cst_42 = arith.constant 1.000000e+00 : f32
    %70 = vector.broadcast %cst_42 : f32 to vector<8x1xf32>
    %71 = arith.subf %70, %68 : vector<8x1xf32>
    %72 = arith.mulf %71, %69 : vector<8x1xf32>
    %c0_43 = arith.constant 0 : index
    %c0_44 = arith.constant 0 : index
    %73 = vector.load %arg16[%c0_43, %c0_44] : memref<8x1xf32, #tpu.memory_space<vmem>>, vector<8x1xf32>
    tpu.vector_store %arg16[%c0_43, %c0_44], %72 {strides = array<i32>} : memref<8x1xf32, #tpu.memory_space<vmem>>, vector<8x1xf32>,
    %c0_45 = arith.constant 0 : index
    %c0_46 = arith.constant 0 : index
    %74 = vector.load %arg12[%c0_45, %c0_46] : memref<1x32xf32, #tpu.memory_space<vmem>>, vector<1x32xf32>
    %75 = vector.broadcast %74 : vector<1x32xf32> to vector<8x32xf32>
    %76 = arith.mulf %11, %75 : vector<8x32xf32>
    %cst_47 = arith.constant dense<0.000000e+00> : vector<8xf32>
    %77 = vector.multi_reduction <add>, %76, %cst_47 [1] : vector<8x32xf32> to vector<8xf32>
    %78 = vector.shape_cast %77 : vector<8xf32> to vector<8x1xf32>
    %c0_48 = arith.constant 0 : index
    %c0_49 = arith.constant 0 : index
    %79 = vector.load %arg13[%c0_48, %c0_49] : memref<1x1xf32, #tpu.memory_space<vmem>>, vector<1x1xf32>
    %80 = vector.broadcast %79 : vector<1x1xf32> to vector<8x1xf32>
    %81 = arith.addf %78, %80 : vector<8x1xf32>
    %cst_50 = arith.constant 0.000000e+00 : f32
    %82 = vector.broadcast %cst_50 : f32 to vector<8x1xf32>
    %83 = arith.cmpf ogt, %81, %82 : vector<8x1xf32>
    %cst_51 = arith.constant 0.00999999977 : f32
    %84 = vector.broadcast %cst_51 : f32 to vector<8x1xf32>
    %85 = arith.mulf %84, %81 : vector<8x1xf32>
    %86 = arith.select %83, %81, %85 : vector<8x1xi1>, vector<8x1xf32>
    %c0_52 = arith.constant 0 : index
    %c0_53 = arith.constant 0 : index
    %87 = vector.load %arg14[%c0_52, %c0_53] : memref<8x1xf32, #tpu.memory_space<vmem>>, vector<8x1xf32>
    tpu.vector_store %arg14[%c0_52, %c0_53], %86 {strides = array<i32>} : memref<8x1xf32, #tpu.memory_space<vmem>>, vector<8x1xf32>,
    return
  }
  func.func @transform_0(%arg0: i32) -> (i32, i32) {
    %c0_i32 = arith.constant 0 : i32
    %c0_i32_0 = arith.constant 0 : i32
    return %arg0, %c0_i32 : i32, i32
  }
  func.func @transform_1(%arg0: i32) -> (i32, i32, i32) {
    %c0_i32 = arith.constant 0 : i32
    %c0_i32_0 = arith.constant 0 : i32
    %c0_i32_1 = arith.constant 0 : i32
    return %arg0, %c0_i32, %c0_i32_0 : i32, i32, i32
  }
  func.func @transform_2(%arg0: i32) -> (i32, i32) {
    %c0_i32 = arith.constant 0 : i32
    %c0_i32_0 = arith.constant 0 : i32
    return %arg0, %c0_i32 : i32, i32
  }
  func.func @transform_3(%arg0: i32) -> (i32, i32) {
    %c0_i32 = arith.constant 0 : i32
    %c0_i32_0 = arith.constant 0 : i32
    return %arg0, %c0_i32 : i32, i32
  }
  func.func @transform_4(%arg0: i32) -> (i32, i32) {
    %c0_i32 = arith.constant 0 : i32
    %c0_i32_0 = arith.constant 0 : i32
    return %arg0, %c0_i32 : i32, i32
  }
  func.func @transform_5(%arg0: i32) -> (i32, i32) {
    %c0_i32 = arith.constant 0 : i32
    %c0_i32_0 = arith.constant 0 : i32
    return %arg0, %c0_i32 : i32, i32
  }
  func.func @transform_6(%arg0: i32) -> (i32, i32) {
    %c0_i32 = arith.constant 0 : i32
    %c0_i32_0 = arith.constant 0 : i32
    %c0_i32_1 = arith.constant 0 : i32
    return %c0_i32, %c0_i32_0 : i32, i32
  }
  func.func @transform_7(%arg0: i32) -> (i32, i32) {
    %c0_i32 = arith.constant 0 : i32
    %c0_i32_0 = arith.constant 0 : i32
    %c0_i32_1 = arith.constant 0 : i32
    return %c0_i32, %c0_i32_0 : i32, i32
  }
  func.func @transform_8(%arg0: i32) -> (i32, i32) {
    %c0_i32 = arith.constant 0 : i32
    %c0_i32_0 = arith.constant 0 : i32
    %c0_i32_1 = arith.constant 0 : i32
    return %c0_i32, %c0_i32_0 : i32, i32
  }
  func.func @transform_9(%arg0: i32) -> (i32, i32) {
    %c0_i32 = arith.constant 0 : i32
    %c0_i32_0 = arith.constant 0 : i32
    %c0_i32_1 = arith.constant 0 : i32
    return %c0_i32, %c0_i32_0 : i32, i32
  }
  func.func @transform_10(%arg0: i32) -> (i32, i32) {
    %c0_i32 = arith.constant 0 : i32
    %c0_i32_0 = arith.constant 0 : i32
    %c0_i32_1 = arith.constant 0 : i32
    return %c0_i32, %c0_i32_0 : i32, i32
  }
  func.func @transform_11(%arg0: i32) -> (i32, i32) {
    %c0_i32 = arith.constant 0 : i32
    %c0_i32_0 = arith.constant 0 : i32
    %c0_i32_1 = arith.constant 0 : i32
    return %c0_i32, %c0_i32_0 : i32, i32
  }
  func.func @transform_12(%arg0: i32) -> (i32, i32) {
    %c0_i32 = arith.constant 0 : i32
    %c0_i32_0 = arith.constant 0 : i32
    %c0_i32_1 = arith.constant 0 : i32
    return %c0_i32, %c0_i32_0 : i32, i32
  }
  func.func @transform_13(%arg0: i32) -> (i32, i32) {
    %c0_i32 = arith.constant 0 : i32
    %c0_i32_0 = arith.constant 0 : i32
    return %arg0, %c0_i32 : i32, i32
  }
  func.func @transform_14(%arg0: i32) -> (i32, i32) {
    %c0_i32 = arith.constant 0 : i32
    %c0_i32_0 = arith.constant 0 : i32
    return %arg0, %c0_i32 : i32, i32
  }
  func.func @transform_15(%arg0: i32) -> (i32, i32) {
    %c0_i32 = arith.constant 0 : i32
    %c0_i32_0 = arith.constant 0 : i32
    return %arg0, %c0_i32 : i32, i32
  }
}

</mosaic_0001>

<bundles_post_ra>
// kernel: tpu_custom_call.1
= control target key start
LH: loop header
LB: loop body
LE: loop exit
PB: predicated region body
PF: predicated region fallthrough
CT: control target
= control target key end

     0   :  { %s877_s0 = inlined_call_operand.vmem [shape: f32[8,32], index: 0, kind: input, shape index: {}]   ;;  %s878_s1 = inlined_call_operand.vmem [shape: f32[8,4,32], index: 1, kind: input, shape index: {}]   ;;  %s879_s2 = inlined_call_operand.vmem [shape: f32[8,4], index: 2, kind: input, shape index: {}]   ;;  %s880_s3 = inlined_call_operand.vmem [shape: f32[8,4], index: 3, kind: input, shape index: {}]   ;;  %s881_s4 = inlined_call_operand.vmem [shape: f32[8,6], index: 4, kind: input, shape index: {}]   ;;  %s882_s5 = inlined_call_operand.vmem [shape: f32[8,1], index: 5, kind: input, shape index: {}]   ;;  %s883_s6 = inlined_call_operand.vmem [shape: bf16[32,32], index: 6, kind: input, shape index: {}]   ;;  %s884_s7 = inlined_call_operand.vmem [shape: f32[1,32], index: 7, kind: input, shape index: {}]   ;;  %s885_s8 = inlined_call_operand.vmem [shape: f32[6,32], index: 8, kind: input, shape index: {}]   ;;  %s886_s9 = inlined_call_operand.vmem [shape: bf16[64,32], index: 9, kind: input, shape index: {}]   ;;  %s887_s10 = inlined_call_operand.vmem [shape: f32[1,32], index: 10, kind: input, shape index: {}]   ;;  %s888_s11 = inlined_call_operand.vmem [shape: f32[1,32], index: 11, kind: input, shape index: {}]   ;;  %s889_s12 = inlined_call_operand.<no memory space> [shape: f32[1,1], index: 12, kind: input, shape index: {}]   ;;  %s890_s13 = inlined_call_operand.vmem [shape: f32[8,1], index: 13, kind: output, shape index: {0}]   ;;  %s891_s14 = inlined_call_operand.hbm [shape: f32[8,32], index: 14, kind: output, shape index: {1}]   ;;  %s892_s15 = inlined_call_operand.vmem [shape: f32[8,1], index: 15, kind: output, shape index: {2}]  }
   0x1   :  { %v21_v0 = vstv %s889_s12 }
   0x2   :  { %22 = vst [vmem:[#allocation2] sm:$0x1] %v21_v0 }
   0x3   :  { %v124_v1 = vld [vmem:[%s879_s2] sm:$0xff]  ;;  %vm128_vm0 = vcmask 31744  }
   0x4   :  { %v125_v2 = vld [vmem:[%s880_s3] sm:$0xff] }
   0x5   :  { %vm126_vm1 = vcmp.gt.f32.partialorder %v125_v2, 0.0 }
   0x6   :  { %v127_v3 = vsel %vm126_vm1, %v124_v1, -1e+30 }
   0x7   :  { %v129_v4 = vsel %vm128_vm0, %v127_v3, -inf }
   0x8   :  { %130 = vmax.xlane.f32.xlu0 %v129_v4 }
   0x9   :  { %23 = vsyncpa [#allocation4], 0  ;;  %v272_v5 = vld [vmem:[%s885_s8] sm:$0x3f]  ;;  %vm277_vm2 = vcmask 1045504   ;;  %v678_v7 = vmov 0.0   ;;  %v150_v16 = vlaneseq }
   0xa   :  { %v271_v6 = vld [vmem:[%s881_s4] sm:$0xff]  ;;  %620 = vmatprep.subr.mxu1 %v678_v7  ;;  %vm679_vm3 = vmmov 0   ;;  %vm273_vm4 = vcmask 48128   ;;  %612 = vmatprep.subr.bf16.mxu0 %v678_v7  ;;  %v644_v29 = vld [vmem:[%s883_s6 + $0x8] sm:$0xff]   ;;  %vm76_vm5 = vcmask 261120   ;;  %v646_v39 = vld [vmem:[%s886_s9 + $0x18] sm:$0xff]  }
   0xb   :  { %622 = vmatprep.mubr.msk.f32.mxu1 %vm679_vm3, %v678_v7  ;;  %621 = vmatpush3.msk.msra.mxu1 %vm277_vm2, %v272_v5  ;;  %v151_v17 = vshrl.u32 %v150_v16, 7  ;;  %v645_v32 = vld [vmem:[%s883_s6] sm:$0xff]   ;;  %v647_v41 = vld [vmem:[%s886_s9 + $0x10] sm:$0xff]   ;;  %v648_v43 = vld [vmem:[%s886_s9 + $0x8] sm:$0xff]   ;;  %vm214_vm6 = vcmask 257024   ;;  %vm439_vm7 = vcmask 1041409  }
   0xc   :  { %623 = vmatmul.mubr.msk.f32.vlgmr.msra.gmra.mxu1 %vm273_vm4, %v271_v6  ;;  %616 = vmatprep.mubr.msk.bf16.mxu0 %vm679_vm3, %v678_v7  ;;  %v51_v35 = vld [vmem:[%s877_s0] sm:$0xff]  ;;  %v144_v48 = vld [vmem:[%s878_s1 + $0x8] sm:$0xf]  ;;  %v145_v59 = vld [vmem:[%s878_s1 + $0xc] sm:$0xf]  ;;  %vm441_vm8 = vcmask 1042434  }
   0xd   :  { %625 = vmatprep.subr.bf16.mxu1 %v678_v7  ;;  %629 = vmatprep.mubr.msk.bf16.mxu1 %vm679_vm3, %v678_v7  ;;  %v166_v18 = vsub.s32 2, %v151_v17  ;;  %v152_v19 = vsub.s32 0, %v151_v17  ;;  %v159_v24 = vsub.s32 1, %v151_v17  ;;  %v173_v26 = vsub.s32 3, %v151_v17  ;;  %v649_v46 = vld [vmem:[%s886_s9] sm:$0xff]   ;;  %s680_s17 = smov [#allocation3]  }
   0xe   :  { %v180_v28 = vsub.s32 4, %v151_v17  ;;  %v187_v31 = vsub.s32 5, %v151_v17  ;;  %613 = vmatpush3.bf16.msra.mxu0 %v644_v29  ;;  %v194_v34 = vsub.s32 6, %v151_v17  ;;  %v52_v36 = vpack.c.bf16 %v51_v35, %v51_v35  ;;  %626 = vmatpush3.bf16.msra.mxu1 %v646_v39  ;;  %v142_v47 = vld [vmem:[%s878_s1] sm:$0xf]  ;;  %s572_s18 = sshll.u32 %s680_s17, 4  ;;  %s573_s18 = int_to_ptr.vmem [resolvable:$true] %s572_s18 }
   0xf   :  { %614 = vmatprep.subr.bf16.mxu0 %v678_v7  ;;  %v201_v38 = vsub.s32 7, %v151_v17  ;;  %627 = vmatprep.subr.bf16.mxu1 %v678_v7  ;;  %v143_v53 = vld [vmem:[%s878_s1 + $0x4] sm:$0xf]  ;;  %vm443_vm9 = vcmask 1043459   ;;  %vm445_vm10 = vcmask 1044484   ;;  %vm447_vm11 = vcmask 1045509   ;;  %p661_p1 = scmp.lt.s32.totalorder %s573_s18, %s573_s18 }
  0x10   :  { %vm449_vm12 = vcmask 1046534   ;;  %vm451_vm13 = vcmask 1047559   ;;  %s656_s19 = scalar_lea.vmem %s573_s18, 128 }
  0x11   :  { %p657_p0 = scmp.ne.s32.totalorder %s573_s18, %s656_s19  ;;  %p662_p2 = scmp.lt.s32.totalorder %s656_s19, %s656_s19 }
  0x12   :  { %615 = vmatpush3.bf16.msra.mxu0 %v645_v32  ;;  %628 = vmatpush3.bf16.msra.mxu1 %v647_v41 }
  0x13   :  { %633 = vmatprep.subr.bf16.mxu0 %v678_v7  ;;  %p663_p3 = por %p662_p2, %p661_p1 }
  0x15   :  { %617 = vmatmul.mubr.msk.bf16.vlgmr.msra.gmra.mxu0 %vm76_vm5, %v52_v36  ;;  %p664_p4 = pnand %p663_p3, %p657_p0 }
  0x16   :  { %637 = vmatprep.mubr.msk.bf16.mxu0 %vm679_vm3, %v678_v7  ;;  %634 = vmatpush3.bf16.msra.mxu0 %v648_v43 }
  0x17   :  { %635 = vmatprep.subr.bf16.mxu0 %v678_v7 }
  0x1a   :  { %636 = vmatpush3.bf16.msra.mxu0 %v649_v46 }
  0x91   :  { %v131_v8 = vpop.xlane.xlu0 %130 }
  0x92   :  { %v132_v9 = vsub.f32 %v127_v3, %v131_v8  ;;  %v146_v3 = vld [vmem:[%s878_s1 + $0x10] sm:$0xf] }
  0x94   :  { %v133_v10 = vmul.f32 1.442695, %v132_v9 }
  0x96   :  { %650 = vpow2.f32 %v133_v10 }
  0xa3   :  { %v651_v11 = vpop.eup %650 }
  0xa4   :  { %v135_v12 = vmul.f32 %v651_v11, %v125_v2 }
  0xa6   :  { %v136_v13 = vsel %vm128_vm0, %v135_v12, 0.0  ;;  %vm539_vm0 = vcmask 7168  }
  0xa7   :  { %137 = vadd.xlane.f32.xlu0 %v136_v13 }
  0xcc   :  { %v347_v42 = vpop.f32.mrf.mxu1 }
  0xcd   :  { %v367_v44 = vpack.c.bf16 %v347_v42, %v347_v42 }
  0xce   :  { %v624_v45 = vpop.f32.mrf.mxu1 }
  0xcf   :  { %630 = vmatmul.mubr.msk.bf16.vlgmr.msra.gmra.mxu1 %vm76_vm5, %v367_v44 }
 0x130   :  { %v138_v14 = vpop.xlane.xlu0 %137 }
 0x131   :  { %v139_v15 = vmax.f32 %v138_v14, 1e-30 }
 0x133   :  { %652 = vrcp.f32 %v139_v15 }
 0x140   :  { %v653_v20 = vpop.eup %652 }
 0x141   :  { %v141_v21 = vmul.f32 %v653_v20, %v135_v12  ;;  %v147_v12 = vld [vmem:[%s878_s1 + $0x14] sm:$0xf] }
 0x143   :  { %v167_v22 = vrot.slane %v141_v21, %v166_v18  ;;  %v153_v23 = vrot.slane %v141_v21, %v152_v19  ;;  %v160_v25 = vrot.slane %v141_v21, %v159_v24  ;;  %v174_v27 = vrot.slane %v141_v21, %v173_v26 }
 0x144   :  { %v181_v30 = vrot.slane %v141_v21, %v180_v28  ;;  %v188_v33 = vrot.slane %v141_v21, %v187_v31  ;;  %v195_v37 = vrot.slane %v141_v21, %v194_v34  ;;  %v202_v40 = vrot.slane %v141_v21, %v201_v38  ;;  %v148_v21 = vld [vmem:[%s878_s1 + $0x18] sm:$0xf] }
 0x145   :  { %169 = vbcast.lane.b32.xlu0 %v167_v22, 256  ;;  %155 = vbcast.lane.b32.xlu1 %v153_v23, 256 }
 0x149   :  { %162 = vbcast.lane.b32.xlu1 %v160_v25, 256 }
 0x14d   :  { %176 = vbcast.lane.b32.xlu1 %v174_v27, 256 }
 0x151   :  { %183 = vbcast.lane.b32.xlu1 %v181_v30, 256 }
 0x155   :  { %190 = vbcast.lane.b32.xlu1 %v188_v33, 256  ;;  %v149_v33 = vld [vmem:[%s878_s1 + $0x1c] sm:$0xf] }
 0x159   :  { %197 = vbcast.lane.b32.xlu1 %v195_v37, 256 }
 0x15d   :  { %204 = vbcast.lane.b32.xlu1 %v202_v40, 256 }
 0x1b7   :  { %v170_v49 = vpop.permute.xlu0 %169  ;;  %v156_v50 = vpop.permute.xlu1 %155 }
 0x1b8   :  { %v206_v51 = vmul.f32 %v156_v50, %v142_v47  ;;  %v208_v52 = vmul.f32 %v170_v49, %v144_v48 }
 0x1ba   :  { %v215_v54 = vsel %vm214_vm6, %v206_v51, 0.0  ;;  %v229_v57 = vsel %vm214_vm6, %v208_v52, 0.0 }
 0x1bb   :  { %v163_v55 = vpop.permute.xlu1 %162  ;;  %v216_v58 = vrot.slane %v215_v54, 4  ;;  %v230_v63 = vrot.slane %v229_v57, 4 }
 0x1bc   :  { %v207_v56 = vmul.f32 %v163_v55, %v143_v53 }
 0x1bd   :  { %v217_v1 = vadd.f32 %v216_v58, %v215_v54  ;;  %v231_v8 = vadd.f32 %v230_v63, %v229_v57 }
 0x1be   :  { %v222_v60 = vsel %vm214_vm6, %v207_v56, 0.0 }
 0x1bf   :  { %v223_v61 = vrot.slane %v222_v60, 4  ;;  %v177_v62 = vpop.permute.xlu1 %176  ;;  %v218_v10 = vrot.slane %v217_v1, 2  ;;  %v232_v17 = vrot.slane %v231_v8, 2 }
 0x1c0   :  { %v209_v0 = vmul.f32 %v177_v62, %v145_v59 }
 0x1c1   :  { %v224_v2 = vadd.f32 %v223_v61, %v222_v60  ;;  %v219_v20 = vadd.f32 %v218_v10, %v217_v1  ;;  %v233_v28 = vadd.f32 %v232_v17, %v231_v8 }
 0x1c2   :  { %v236_v4 = vsel %vm214_vm6, %v209_v0, 0.0 }
 0x1c3   :  { %v225_v5 = vrot.slane %v224_v2, 2  ;;  %v237_v6 = vrot.slane %v236_v4, 4  ;;  %v184_v7 = vpop.permute.xlu1 %183  ;;  %v220_v31 = vrot.slane %v219_v20, 1  ;;  %v234_v41 = vrot.slane %v233_v28, 1 }
 0x1c4   :  { %v210_v9 = vmul.f32 %v184_v7, %v146_v3 }
 0x1c5   :  { %v238_v11 = vadd.f32 %v237_v6, %v236_v4  ;;  %v226_v13 = vadd.f32 %v225_v5, %v224_v2  ;;  %v221_v44 = vadd.f32 %v220_v31, %v219_v20  ;;  %v235_v53 = vadd.f32 %v234_v41, %v233_v28  ;;  %v599_v28 = vld [vmem:[%s888_s11] ss:$0 sm:$0xff] }
 0x1c6   :  { %v243_v14 = vsel %vm214_vm6, %v210_v9, 0.0  ;;  %v598_v41 = vld [vmem:[%s887_s10] ss:$0 sm:$0xff] }
 0x1c7   :  { %v239_v15 = vrot.slane %v238_v11, 2  ;;  %v191_v16 = vpop.permute.xlu1 %190  ;;  %v244_v18 = vrot.slane %v243_v14, 4  ;;  %v227_v22 = vrot.slane %v226_v13, 1  ;;  %v359_v55 = vpack.c.bf16 %v221_v44, %v221_v44 }
 0x1c8   :  { %v211_v19 = vmul.f32 %v191_v16, %v147_v12  ;;  %v361_v63 = vpack.c.bf16 %v235_v53, %v235_v53 }
 0x1c9   :  { %v245_v23 = vadd.f32 %v244_v18, %v243_v14  ;;  %v240_v25 = vadd.f32 %v239_v15, %v238_v11  ;;  %v228_v34 = vadd.f32 %v227_v22, %v226_v13  ;;  %v431_v1 = vunpack.c.l.b16 %v359_v55 }
 0x1ca   :  { %v250_v24 = vsel %vm214_vm6, %v211_v19, 0.0  ;;  %v433_v9 = vunpack.c.l.b16 %v361_v63 }
 0x1cb   :  { %v251_v26 = vrot.slane %v250_v24, 4  ;;  %v198_v27 = vpop.permute.xlu1 %197  ;;  %v246_v29 = vrot.slane %v245_v23, 2  ;;  %v241_v37 = vrot.slane %v240_v25, 1  ;;  %v360_v47 = vpack.c.bf16 %v228_v34, %v228_v34 }
 0x1cc   :  { %v212_v30 = vmul.f32 %v198_v27, %v148_v21 }
 0x1cd   :  { %v252_v32 = vadd.f32 %v251_v26, %v250_v24  ;;  %v247_v35 = vadd.f32 %v246_v29, %v245_v23  ;;  %v242_v49 = vadd.f32 %v241_v37, %v240_v25  ;;  %v432_v59 = vunpack.c.l.b16 %v360_v47  ;;  %v586_v23 = vld [vmem:[%s884_s7] ss:$0 sm:$0xff]  ;;  %v114_v24 = vpop.f32.mrf.mxu0 }
 0x1ce   :  { %v257_v36 = vsel %vm214_vm6, %v212_v30, 0.0  ;;  %v115_v25 = vadd.f32 %v586_v23, %v114_v24 }
 0x1cf   :  { %v253_v38 = vrot.slane %v252_v32, 2  ;;  %v258_v39 = vrot.slane %v257_v36, 4  ;;  %v205_v40 = vpop.permute.xlu1 %204  ;;  %v248_v42 = vrot.slane %v247_v35, 1  ;;  %v362_v60 = vpack.c.bf16 %v242_v49, %v242_v49  ;;  %v618_v26 = vpop.f32.mrf.mxu0 }
 0x1d0   :  { %v213_v43 = vmul.f32 %v205_v40, %v149_v33  ;;  %v440_v5 = vsel %vm439_vm7, %v432_v59, %v431_v1  ;;  %vm120_vm14 = vcmp.gt.f32.partialorder %v115_v25, 0.0  ;;  %v121_v27 = vmul.f32 0.01, %v115_v25 }
 0x1d1   :  { %v254_v45 = vadd.f32 %v253_v38, %v252_v32  ;;  %v259_v46 = vadd.f32 %v258_v39, %v257_v36  ;;  %v249_v54 = vadd.f32 %v248_v42, %v247_v35  ;;  %v434_v6 = vunpack.c.l.b16 %v362_v60  ;;  %v117_v29 = vpop.f32.mrf.mxu0  ;;  %v417_v35 = vpop.f32.mrf.mxu1 }
 0x1d2   :  { %v264_v48 = vsel %vm214_vm6, %v213_v43, 0.0  ;;  %v442_v13 = vsel %vm441_vm8, %v433_v9, %v440_v5  ;;  %v122_v30 = vsel %vm120_vm14, %v115_v25, %v121_v27 }
 0x1d3   :  { %v255_v50 = vrot.slane %v254_v45, 1  ;;  %v260_v51 = vrot.slane %v259_v46, 2  ;;  %v265_v52 = vrot.slane %v264_v48, 4  ;;  %v363_v0 = vpack.c.bf16 %v249_v54, %v249_v54  ;;  %123 = vst.msk [vmem:[#allocation3] sm:$0xff] %vm76_vm5, %v122_v30  ;;  %v619_v31 = vpop.f32.mrf.mxu0  ;;  %v631_v37 = vpop.f32.mrf.mxu1 }
 0x1d4   :  { %v444_v15 = vsel %vm443_vm9, %v434_v6, %v442_v13  ;;  %v524_v32 = vmul.f32 %v122_v30, %v122_v30  ;;  %v548_v33 = vmul.f32 %v599_v28, %v122_v30 }
 0x1d5   :  { %v256_v56 = vadd.f32 %v255_v50, %v254_v45  ;;  %v261_v57 = vadd.f32 %v260_v51, %v259_v46  ;;  %v266_v58 = vadd.f32 %v265_v52, %v264_v48  ;;  %v435_v10 = vunpack.c.l.b16 %v363_v0  ;;  %v420_v38 = vpop.f32.mrf.mxu1  ;;  %v600_v48 = vld [vmem:[#allocation2] ss:$0 sm:$0xff] }
 0x1d6   :  { %v525_v34 = vsel %vm76_vm5, %v524_v32, 0.0  ;;  %v549_v36 = vsel %vm76_vm5, %v548_v33, 0.0 }
 0x1d7   :  { %v262_v61 = vrot.slane %v261_v57, 1  ;;  %v267_v62 = vrot.slane %v266_v58, 2  ;;  %v364_v2 = vpack.c.bf16 %v256_v56, %v256_v56  ;;  %v446_v17 = vsel %vm445_vm10, %v435_v10, %v444_v15  ;;  %526 = vadd.xlane.f32.xlu1 %v525_v34  ;;  %v632_v39 = vpop.f32.mrf.mxu1 }
 0x1d9   :  { %v263_v3 = vadd.f32 %v262_v61, %v261_v57  ;;  %v268_v4 = vadd.f32 %v267_v62, %v266_v58  ;;  %v436_v11 = vunpack.c.l.b16 %v364_v2 }
 0x1db   :  { %v365_v7 = vpack.c.bf16 %v263_v3, %v263_v3  ;;  %v269_v8 = vrot.slane %v268_v4, 1  ;;  %v448_v18 = vsel %vm447_vm11, %v436_v11, %v446_v17  ;;  %550 = vadd.xlane.f32.xlu1 %v549_v36 }
 0x1dd   :  { %v270_v12 = vadd.f32 %v269_v8, %v268_v4  ;;  %v437_v14 = vunpack.c.l.b16 %v365_v7 }
 0x1df   :  { %v366_v16 = vpack.c.bf16 %v270_v12, %v270_v12  ;;  %v450_v20 = vsel %vm449_vm12, %v437_v14, %v448_v18 }
 0x1e1   :  { %v438_v19 = vunpack.c.l.b16 %v366_v16 }
 0x1e3   :  { %v452_v21 = vsel %vm451_vm13, %v438_v19, %v450_v20 }
 0x1e4   :  { %v453_v22 = vpack.c.b16 %v452_v21, %v452_v21 }
 0x1e6   :  { %638 = vmatmul.mubr.msk.bf16.vlgmr.msra.gmra.mxu0 %vm76_vm5, %v453_v22 }
 0x260   :  { %v527_v45 = vpop.xlane.xlu1 %526 }
 0x264   :  { %v551_v51 = vpop.xlane.xlu1 %550 }
 0x265   :  { %v559_v53 = vadd.f32 %v600_v48, %v551_v51 }
 0x267   :  { %vm560_vm1 = vcmp.gt.f32.partialorder %v559_v53, 0.0  ;;  %v561_v56 = vmul.f32 0.01, %v559_v53 }
 0x269   :  { %v562_v57 = vsel %vm560_vm1, %v559_v53, %v561_v56 }
 0x26a   :  { %563 = vst.msk [vmem:[%s890_s13] sm:$0xff] %vm539_vm0, %v562_v57 }
 0x2a6   :  { %v503_v40 = vpop.f32.mrf.mxu0 }
 0x2a7   :  { %v504_v42 = vadd.f32 %v503_v40, %v417_v35 }
 0x2a8   :  { %v639_v43 = vpop.f32.mrf.mxu0 }
 0x2a9   :  { %v516_v44 = vadd.f32 %v598_v41, %v504_v42 }
 0x2aa   :  { %v506_v46 = vpop.f32.mrf.mxu0 }
 0x2ab   :  { %v518_v47 = vmul.f32 0.01, %v516_v44  ;;  %vm517_vm15 = vcmp.gt.f32.partialorder %v516_v44, 0.0 }
 0x2ac   :  { %v640_v49 = vpop.f32.mrf.mxu0 }
 0x2ad   :  { %v519_v50 = vsel %vm517_vm15, %v516_v44, %v518_v47 }
 0x2ae   :  { %v528_v52 = vmul.f32 %v519_v50, %v519_v50  ;;  %v520_v55 = vmul.f32 %v519_v50, %v122_v30 }
 0x2b0   :  { %v529_v54 = vsel %vm76_vm5, %v528_v52, 0.0  ;;  %v521_v58 = vsel %vm76_vm5, %v520_v55, 0.0 }
 0x2b1   :  { %530 = vadd.xlane.f32.xlu0 %v529_v54 }
 0x2b5   :  { %522 = vadd.xlane.f32.xlu0 %v521_v58 }
 0x2b6   :  { %667 = shalt.err (!%p664_p4)
}
 0x2b7   :  { %575 = dma.vmem_to_hbm [thread:$0]  %s573_s18, 128, %s891_s14, [#allocation4]   ;;  %v536_v1 = vld [vmem:[%s882_s5] sm:$0xff] }
 0x33a   :  { %v531_v59 = vpop.xlane.xlu0 %530 }
 0x33b   :  { %v532_v60 = vmul.f32 %v531_v59, %v527_v45 }
 0x33d   :  { %v533_v61 = vmax.f32 %v532_v60, 1e-16 }
 0x33e   :  { %v523_v63 = vpop.xlane.xlu0 %522 }
 0x33f   :  { %654 = vrsqrt.f32 %v533_v61 }
 0x34c   :  { %v655_v62 = vpop.eup %654 }
 0x34d   :  { %v535_v0 = vmul.f32 %v655_v62, %v523_v63 }
 0x34f   :  { %v537_v2 = vsub.f32 1.0, %v535_v0 }
 0x351   :  { %v538_v3 = vmul.f32 %v537_v2, %v536_v1 }
 0x353   :  { %540 = vst.msk [vmem:[%s892_s15] sm:$0xff] %vm539_vm0, %v538_v3 }
 0x354   :  { %676 = dma.done.wait [#allocation4], 128  }
 0x355   :  { %677 = vsyncadd [#allocation4], 4294967168 }
 0x356   :  { %585 = vsyncpa [#allocation4], 1 }

</bundles_post_ra>
